<compile_context>
chip_gen: v7x
topology: tpu7x:2x2x1
jax: 0.10.0
libtpu: 0.0.40
codegen_flags: <defaults>
</compile_context>

<pallas_src>
import functools

import jax
import jax.numpy as jnp
from jax.experimental import pallas as pl
from jax.experimental.pallas import tpu as pltpu


def _round_up(x, m):
    return (x + m - 1) // m * m


def _tpu_budget():
    """Returns (tile VMEM budget bytes, vmem_limit_bytes override or None, #TensorCores)."""
    budget, vmem_limit, num_tc = 12 * 1024 * 1024, None, 1
    try:
        info = pltpu.get_tpu_info()
        cap = int(getattr(info, "vmem_capacity_bytes", 0) or 0)
        if cap >= 96 * 1024 * 1024:            # v5e / v6e: 128 MiB physical VMEM per TC
            budget, vmem_limit = 24 * 1024 * 1024, 48 * 1024 * 1024
        elif cap > 0:                          # v7x: 64 MiB physical VMEM per TC, 2 TCs
            budget, vmem_limit = 20 * 1024 * 1024, 40 * 1024 * 1024
            num_tc = 2
        cores = getattr(info, "num_cores", None)
        if isinstance(cores, int) and cores > 0:
            num_tc = max(num_tc, cores)
    except Exception:
        pass  # unknown / no query available: keep conservative defaults
    return budget, vmem_limit, max(num_tc, 1)


def _decoder_kernel(mw_ref, mask_ref, w_ref, out_ref, tail_ref, carry_ref,
                    *, tail_col, precision):
    # mw_ref, mask_ref: (BM, N, TK)   w_ref: (L, N)  (PyTorch Linear weight, native dtype)
    # out_ref:  (BM, H, TK)  -- lane = output subframe index (0..K-1 slice of the slab)
    # tail_ref: (BM, H, 1)   -- final output subframe K (2nd half of the last frame)
    # carry_ref:(BM, H, 1)   -- VMEM scratch: 2nd half of the previous tile's last frame
    t = pl.program_id(1)
    nt = pl.num_programs(1)
    bm = mw_ref.shape[0]
    tk = mw_ref.shape[2]
    h = w_ref.shape[0] // 2

    @pl.when(t == 0)
    def _():
        carry_ref[...] = jnp.zeros_like(carry_ref)

    w = w_ref[...]                                                  # (L, N) native dtype
    col0 = jax.lax.broadcasted_iota(jnp.int32, (h, tk), 1) == 0     # hoisted out of m loop

    for m in range(bm):  # small static unroll (BM <= 2): clean 2-D MXU matmuls, K on lanes
        s_m = mw_ref[m] * mask_ref[m]                               # (N, TK), native dtype
        y = jax.lax.dot_general(
            w, s_m,
            dimension_numbers=(((1,), (0,)), ((), ())),
            preferred_element_type=jnp.float32,
            precision=precision)                                    # (L, TK), f32 acc
        a = y[:h, :]                                                # 1st half of each frame
        b = y[h:, :]                                                # 2nd half of each frame
        # overlap-and-add with hop H:  out[:, j] = a[:, j] + b[:, j-1]
        b_prev = pltpu.roll(b, shift=1, axis=1)                     # XLU lane rotate
        b_prev = jnp.where(col0, carry_ref[m], b_prev)              # j==0 takes cross-tile carry
        out_ref[m, :, :] = (a + b_prev).astype(out_ref.dtype)
        carry_ref[m] = b[:, tk - 1:tk]                              # carry into the next K-tile

        @pl.when(t == nt - 1)
        def _():
            # final output subframe (index K) = 2nd half of the last *real* frame.
            # tail_col = (K-1) % TK is a static column, so this is a static slice.
            tail_ref[m, :, :] = b[:, tail_col:tail_col + 1].astype(tail_ref.dtype)


def decoder_forward(mixture_w, est_mask, weight, *, precision=None):
    """mixture_w, est_mask: [M, N, K]; weight: PyTorch nn.Linear(N, L) weight [L, N]."""
    M, N, K = mixture_w.shape
    L, N_w = weight.shape
    assert N_w == N, "weight must be the PyTorch [L, N] Linear weight"
    assert L % 2 == 0 and K >= 1, "overlap_and_add with hop L//2 needs even L"
    H = L // 2
    out_dtype = mixture_w.dtype
    in_itemsize = jnp.dtype(mixture_w.dtype).itemsize
    out_itemsize = jnp.dtype(out_dtype).itemsize
    w_itemsize = jnp.dtype(weight.dtype).itemsize

    # f32 inputs: HIGHEST to match fp32 GEMM semantics (hidden under DMA for this
    # mem-bound kernel); bf16 inputs: native single-pass MXU (no upcast, no flag).
    if precision is None and jnp.dtype(mixture_w.dtype) == jnp.float32:
        precision = jax.lax.Precision.HIGHEST

    budget, vmem_limit, num_tc = _tpu_budget()

    # ---- tile selection ------------------------------------------------------
    # Prefer growing the lane-dense TK (fewer grid steps, longer DMA rows) over BM.
    TK = min(2048, _round_up(K, 128))
    BM = 2 if (M % 2 == 0 and M >= 2) else 1
    if num_tc > 1:  # keep >= num_tc blocks on the "parallel" M axis (v7x megacore)
        BM = min(BM, max(1, M // num_tc))

    def _vmem_need(bm, tk):
        in_buf = 2 * 2 * bm * N * tk * in_itemsize            # 2 inputs x double buffer
        out_buf = 2 * bm * H * (tk + 1) * out_itemsize        # main + tail outputs
        w_buf = 2 * L * N * w_itemsize
        temps = bm * tk * (N + L) * 4                         # f32 s_m / y live per unrolled m
        return in_buf + out_buf + w_buf + bm * H * 4 + temps

    while _vmem_need(BM, TK) > budget and BM > 1:
        BM //= 2
    while _vmem_need(BM, TK) > budget and TK > 128:
        TK -= 128

    NT = pl.cdiv(K, TK)              # exactly covers the K frames -- no redundant tile
    grid = (M // BM, NT)
    tail_col = (K - 1) % TK          # static tile-local column of the last real frame

    kernel = functools.partial(_decoder_kernel, tail_col=tail_col, precision=precision)

    cp_kwargs = dict(dimension_semantics=("parallel", "arbitrary"))
    if vmem_limit is not None:
        cp_kwargs["vmem_limit_bytes"] = vmem_limit

    main, tail = pl.pallas_call(
        kernel,
        out_shape=(jax.ShapeDtypeStruct((M, H, K), out_dtype),
                   jax.ShapeDtypeStruct((M, H, 1), out_dtype)),
        grid_spec=pltpu.PrefetchScalarGridSpec(
            num_scalar_prefetch=0,
            grid=grid,
            in_specs=[
                pl.BlockSpec((BM, N, TK), lambda i, t: (i, 0, t)),
                pl.BlockSpec((BM, N, TK), lambda i, t: (i, 0, t)),
                pl.BlockSpec((L, N), lambda i, t: (0, 0)),
            ],
            out_specs=[
                pl.BlockSpec((BM, H, TK), lambda i, t: (i, 0, t)),
                pl.BlockSpec((BM, H, 1), lambda i, t: (i, 0, 0)),
            ],
            scratch_shapes=[pltpu.VMEM((BM, H, 1), jnp.float32)],
        ),
        compiler_params=pltpu.CompilerParams(**cp_kwargs),
    )(mixture_w, est_mask, weight)

    # slab[m, h, j] is time sample j*H + h  ->  [M, T], T = (K+1)*H = (L//2)*(K-1) + L.
    # NOTE: this transpose/reshape is the only HBM traffic outside the kernel; if it
    # shows up in a trace, keep the slab layout for (or fuse it into) the consumer.
    slab = jnp.concatenate([main, tail], axis=2)            # (M, H, K+1)
    return jnp.transpose(slab, (0, 2, 1)).reshape(M, (K + 1) * H)


def _reference_forward(mixture_w, est_mask, weight):
    # pure-JAX reference mirroring the PyTorch code (incl. generic overlap_and_add)
    s = jnp.einsum('mnk,ln->mkl', mixture_w * est_mask, weight,
                   precision=jax.lax.Precision.HIGHEST)          # [M, K, L]
    M, K, L = s.shape
    H = L // 2
    T = H * (K - 1) + L
    idx = (jnp.arange(K)[:, None] * H + jnp.arange(L)[None, :]).reshape(-1)
    out = jnp.zeros((M, T), s.dtype)
    return out.at[:, idx].add(s.reshape(M, -1))


if __name__ == "__main__":
    # Small, deterministic shapes consistent with the module:
    M, N, K, L = 2, 32, 16, 8            # batch, basis channels, frames, filter length
    key = jax.random.PRNGKey(0)
    k1, k2, k3 = jax.random.split(key, 3)

    mixture_w = jax.random.normal(k1, (M, N, K), dtype=jnp.float32)
    est_mask = jax.nn.sigmoid(jax.random.normal(k2, (M, N, K), dtype=jnp.float32))
    # nn.Linear(N, L, bias=False) weight: [L, N], uniform(-1/sqrt(N), 1/sqrt(N))
    bound = 1.0 / (N ** 0.5)
    weight = jax.random.uniform(k3, (L, N), dtype=jnp.float32,
                                minval=-bound, maxval=bound)

    out = decoder_forward(mixture_w, est_mask, weight)
    out = jax.block_until_ready(out)

    ref = _reference_forward(mixture_w, est_mask, weight)
    assert out.shape == (M, (L // 2) * (K - 1) + L)
    assert jnp.allclose(out, ref, atol=1e-5, rtol=1e-5), "mismatch vs JAX reference"

    print("KERNEL_OK")
</pallas_src>

<mosaic_0001>
module attributes {stable_mosaic.version = 11 : i64} {
  func.func @_decoder_kernel(%arg0: i32, %arg1: i32, %arg2: memref<2x32x128xf32, #tpu.memory_space<vmem>>, %arg3: memref<2x32x128xf32, #tpu.memory_space<vmem>>, %arg4: memref<8x32xf32, #tpu.memory_space<vmem>>, %arg5: memref<2x4x128xf32, #tpu.memory_space<vmem>>, %arg6: memref<2x4x1xf32, #tpu.memory_space<vmem>>, %arg7: memref<2x4x1xf32, #tpu.memory_space<vmem>>) attributes {dimension_semantics = [#tpu.dimension_semantics<parallel>, #tpu.dimension_semantics<arbitrary>], iteration_bounds = array<i64: 1, 1>, scalar_prefetch = 0 : i64, scratch_operands = 1 : i64, tpu.core_type = #tpu.core_type<tc>, window_params = [{transform_indices = @transform_0, window_bounds = array<i64: 2, 32, 128>}, {transform_indices = @transform_1, window_bounds = array<i64: 2, 32, 128>}, {pipeline_mode = #tpu.pipeline_mode<synchronous>, transform_indices = @transform_2, window_bounds = array<i64: 8, 32>}, {transform_indices = @transform_3, window_bounds = array<i64: 2, 4, 128>}, {transform_indices = @transform_4, window_bounds = array<i64: 2, 4, 1>}]} {
    %c0_i32 = arith.constant 0 : i32
    %0 = arith.cmpi eq, %arg1, %c0_i32 : i32
    %1 = arith.extui %0 : i1 to i32
    %c0_i32_0 = arith.constant 0 : i32
    %2 = arith.cmpi ne, %1, %c0_i32_0 : i32
    scf.if %2 {
      %cst_38 = arith.constant 0.000000e+00 : f32
      %57 = vector.broadcast %cst_38 : f32 to vector<2x4x1xf32>
      %c0_39 = arith.constant 0 : index
      %c0_40 = arith.constant 0 : index
      %c0_41 = arith.constant 0 : index
      %58 = vector.load %arg7[%c0_39, %c0_40, %c0_41] : memref<2x4x1xf32, #tpu.memory_space<vmem>>, vector<2x4x1xf32>
      tpu.vector_store %arg7[%c0_39, %c0_40, %c0_41], %57 {strides = array<i32>} : memref<2x4x1xf32, #tpu.memory_space<vmem>>, vector<2x4x1xf32>,
    } else {
    }
    %c0 = arith.constant 0 : index
    %c0_1 = arith.constant 0 : index
    %3 = vector.load %arg4[%c0, %c0_1] : memref<8x32xf32, #tpu.memory_space<vmem>>, vector<8x32xf32>
    %4 = tpu.iota {dimensions = array<i32: 1>} : vector<4x128xi32>
    %c0_i32_2 = arith.constant 0 : i32
    %5 = vector.broadcast %c0_i32_2 : i32 to vector<4x128xi32>
    %6 = arith.cmpi eq, %4, %5 : vector<4x128xi32>
    %c0_3 = arith.constant 0 : index
    %c0_4 = arith.constant 0 : index
    %c0_5 = arith.constant 0 : index
    %7 = vector.load %arg2[%c0_3, %c0_4, %c0_5] : memref<2x32x128xf32, #tpu.memory_space<vmem>>, vector<1x32x128xf32>
    %8 = vector.shape_cast %7 : vector<1x32x128xf32> to vector<32x128xf32>
    %c0_6 = arith.constant 0 : index
    %c0_7 = arith.constant 0 : index
    %c0_8 = arith.constant 0 : index
    %9 = vector.load %arg3[%c0_6, %c0_7, %c0_8] : memref<2x32x128xf32, #tpu.memory_space<vmem>>, vector<1x32x128xf32>
    %10 = vector.shape_cast %9 : vector<1x32x128xf32> to vector<32x128xf32>
    %11 = arith.mulf %8, %10 : vector<32x128xf32>
    %cst = arith.constant dense<0.000000e+00> : vector<8x128xf32>
    %12 = tpu.matmul %3, %11, %cst {dimension_numbers = #tpu.dot_dimension_numbers<[1], [0], [0], [1], [0, 0, 1, 1], [], []>, precision = #tpu.contract_precision<fp32>} : vector<8x32xf32>, vector<32x128xf32>, vector<8x128xf32> -> vector<8x128xf32>
    %13 = vector.extract_strided_slice %12 {offsets = [0, 0], sizes = [4, 128], strides = [1, 1]} : vector<8x128xf32> to vector<4x128xf32>
    %14 = vector.extract_strided_slice %12 {offsets = [4, 0], sizes = [4, 128], strides = [1, 1]} : vector<8x128xf32> to vector<4x128xf32>
    %c1_i32 = arith.constant 1 : i32
    %15 = tpu.dynamic_rotate %14 by %c1_i32 dim 1 : vector<4x128xf32>, i32 -> vector<4x128xf32>
    %c0_9 = arith.constant 0 : index
    %c0_10 = arith.constant 0 : index
    %c0_11 = arith.constant 0 : index
    %16 = vector.load %arg7[%c0_9, %c0_10, %c0_11] : memref<2x4x1xf32, #tpu.memory_space<vmem>>, vector<1x4x1xf32>
    %17 = vector.shape_cast %16 : vector<1x4x1xf32> to vector<4x1xf32>
    %18 = vector.shape_cast %17 : vector<4x1xf32> to vector<4x1xf32>
    %19 = vector.broadcast %18 : vector<4x1xf32> to vector<4x128xf32>
    %20 = arith.select %6, %19, %15 : vector<4x128xi1>, vector<4x128xf32>
    %21 = arith.addf %13, %20 : vector<4x128xf32>
    %c0_12 = arith.constant 0 : index
    %c0_13 = arith.constant 0 : index
    %c0_14 = arith.constant 0 : index
    %22 = vector.load %arg5[%c0_12, %c0_13, %c0_14] : memref<2x4x128xf32, #tpu.memory_space<vmem>>, vector<1x4x128xf32>
    %23 = vector.shape_cast %22 : vector<1x4x128xf32> to vector<4x128xf32>
    %24 = vector.shape_cast %21 : vector<4x128xf32> to vector<1x4x128xf32>
    tpu.vector_store %arg5[%c0_12, %c0_13, %c0_14], %24 {strides = array<i32>} : memref<2x4x128xf32, #tpu.memory_space<vmem>>, vector<1x4x128xf32>,
    %25 = vector.extract_strided_slice %14 {offsets = [0, 127], sizes = [4, 1], strides = [1, 1]} : vector<4x128xf32> to vector<4x1xf32>
    %c0_15 = arith.constant 0 : index
    %c0_16 = arith.constant 0 : index
    %c0_17 = arith.constant 0 : index
    %26 = vector.load %arg7[%c0_15, %c0_16, %c0_17] : memref<2x4x1xf32, #tpu.memory_space<vmem>>, vector<1x4x1xf32>
    %27 = vector.shape_cast %26 : vector<1x4x1xf32> to vector<4x1xf32>
    %28 = vector.shape_cast %25 : vector<4x1xf32> to vector<1x4x1xf32>
    tpu.vector_store %arg7[%c0_15, %c0_16, %c0_17], %28 {strides = array<i32>} : memref<2x4x1xf32, #tpu.memory_space<vmem>>, vector<1x4x1xf32>,
    %c0_i32_18 = arith.constant 0 : i32
    %29 = arith.cmpi eq, %arg1, %c0_i32_18 : i32
    %30 = arith.extui %29 : i1 to i32
    %c0_i32_19 = arith.constant 0 : i32
    %31 = arith.cmpi ne, %30, %c0_i32_19 : i32
    scf.if %31 {
      %57 = vector.extract_strided_slice %14 {offsets = [0, 15], sizes = [4, 1], strides = [1, 1]} : vector<4x128xf32> to vector<4x1xf32>
      %c0_38 = arith.constant 0 : index
      %c0_39 = arith.constant 0 : index
      %c0_40 = arith.constant 0 : index
      %58 = vector.load %arg6[%c0_38, %c0_39, %c0_40] : memref<2x4x1xf32, #tpu.memory_space<vmem>>, vector<1x4x1xf32>
      %59 = vector.shape_cast %58 : vector<1x4x1xf32> to vector<4x1xf32>
      %60 = vector.shape_cast %57 : vector<4x1xf32> to vector<1x4x1xf32>
      tpu.vector_store %arg6[%c0_38, %c0_39, %c0_40], %60 {strides = array<i32>} : memref<2x4x1xf32, #tpu.memory_space<vmem>>, vector<1x4x1xf32>,
    } else {
    }
    %c1 = arith.constant 1 : index
    %c0_20 = arith.constant 0 : index
    %c0_21 = arith.constant 0 : index
    %32 = vector.load %arg2[%c1, %c0_20, %c0_21] : memref<2x32x128xf32, #tpu.memory_space<vmem>>, vector<1x32x128xf32>
    %33 = vector.shape_cast %32 : vector<1x32x128xf32> to vector<32x128xf32>
    %c1_22 = arith.constant 1 : index
    %c0_23 = arith.constant 0 : index
    %c0_24 = arith.constant 0 : index
    %34 = vector.load %arg3[%c1_22, %c0_23, %c0_24] : memref<2x32x128xf32, #tpu.memory_space<vmem>>, vector<1x32x128xf32>
    %35 = vector.shape_cast %34 : vector<1x32x128xf32> to vector<32x128xf32>
    %36 = arith.mulf %33, %35 : vector<32x128xf32>
    %cst_25 = arith.constant dense<0.000000e+00> : vector<8x128xf32>
    %37 = tpu.matmul %3, %36, %cst_25 {dimension_numbers = #tpu.dot_dimension_numbers<[1], [0], [0], [1], [0, 0, 1, 1], [], []>, precision = #tpu.contract_precision<fp32>} : vector<8x32xf32>, vector<32x128xf32>, vector<8x128xf32> -> vector<8x128xf32>
    %38 = vector.extract_strided_slice %37 {offsets = [0, 0], sizes = [4, 128], strides = [1, 1]} : vector<8x128xf32> to vector<4x128xf32>
    %39 = vector.extract_strided_slice %37 {offsets = [4, 0], sizes = [4, 128], strides = [1, 1]} : vector<8x128xf32> to vector<4x128xf32>
    %c1_i32_26 = arith.constant 1 : i32
    %40 = tpu.dynamic_rotate %39 by %c1_i32_26 dim 1 : vector<4x128xf32>, i32 -> vector<4x128xf32>
    %c1_27 = arith.constant 1 : index
    %c0_28 = arith.constant 0 : index
    %c0_29 = arith.constant 0 : index
    %41 = vector.load %arg7[%c1_27, %c0_28, %c0_29] : memref<2x4x1xf32, #tpu.memory_space<vmem>>, vector<1x4x1xf32>
    %42 = vector.shape_cast %41 : vector<1x4x1xf32> to vector<4x1xf32>
    %43 = vector.shape_cast %42 : vector<4x1xf32> to vector<4x1xf32>
    %44 = vector.broadcast %43 : vector<4x1xf32> to vector<4x128xf32>
    %45 = arith.select %6, %44, %40 : vector<4x128xi1>, vector<4x128xf32>
    %46 = arith.addf %38, %45 : vector<4x128xf32>
    %c1_30 = arith.constant 1 : index
    %c0_31 = arith.constant 0 : index
    %c0_32 = arith.constant 0 : index
    %47 = vector.load %arg5[%c1_30, %c0_31, %c0_32] : memref<2x4x128xf32, #tpu.memory_space<vmem>>, vector<1x4x128xf32>
    %48 = vector.shape_cast %47 : vector<1x4x128xf32> to vector<4x128xf32>
    %49 = vector.shape_cast %46 : vector<4x128xf32> to vector<1x4x128xf32>
    tpu.vector_store %arg5[%c1_30, %c0_31, %c0_32], %49 {strides = array<i32>} : memref<2x4x128xf32, #tpu.memory_space<vmem>>, vector<1x4x128xf32>,
    %50 = vector.extract_strided_slice %39 {offsets = [0, 127], sizes = [4, 1], strides = [1, 1]} : vector<4x128xf32> to vector<4x1xf32>
    %c1_33 = arith.constant 1 : index
    %c0_34 = arith.constant 0 : index
    %c0_35 = arith.constant 0 : index
    %51 = vector.load %arg7[%c1_33, %c0_34, %c0_35] : memref<2x4x1xf32, #tpu.memory_space<vmem>>, vector<1x4x1xf32>
    %52 = vector.shape_cast %51 : vector<1x4x1xf32> to vector<4x1xf32>
    %53 = vector.shape_cast %50 : vector<4x1xf32> to vector<1x4x1xf32>
    tpu.vector_store %arg7[%c1_33, %c0_34, %c0_35], %53 {strides = array<i32>} : memref<2x4x1xf32, #tpu.memory_space<vmem>>, vector<1x4x1xf32>,
    %c0_i32_36 = arith.constant 0 : i32
    %54 = arith.cmpi eq, %arg1, %c0_i32_36 : i32
    %55 = arith.extui %54 : i1 to i32
    %c0_i32_37 = arith.constant 0 : i32
    %56 = arith.cmpi ne, %55, %c0_i32_37 : i32
    scf.if %56 {
      %57 = vector.extract_strided_slice %39 {offsets = [0, 15], sizes = [4, 1], strides = [1, 1]} : vector<4x128xf32> to vector<4x1xf32>
      %c1_38 = arith.constant 1 : index
      %c0_39 = arith.constant 0 : index
      %c0_40 = arith.constant 0 : index
      %58 = vector.load %arg6[%c1_38, %c0_39, %c0_40] : memref<2x4x1xf32, #tpu.memory_space<vmem>>, vector<1x4x1xf32>
      %59 = vector.shape_cast %58 : vector<1x4x1xf32> to vector<4x1xf32>
      %60 = vector.shape_cast %57 : vector<4x1xf32> to vector<1x4x1xf32>
      tpu.vector_store %arg6[%c1_38, %c0_39, %c0_40], %60 {strides = array<i32>} : memref<2x4x1xf32, #tpu.memory_space<vmem>>, vector<1x4x1xf32>,
    } else {
    }
    return
  }
  func.func @transform_0(%arg0: i32, %arg1: i32) -> (i32, i32, i32) {
    %c0_i32 = arith.constant 0 : i32
    %c0_i32_0 = arith.constant 0 : i32
    return %arg0, %c0_i32, %arg1 : i32, i32, i32
  }
  func.func @transform_1(%arg0: i32, %arg1: i32) -> (i32, i32, i32) {
    %c0_i32 = arith.constant 0 : i32
    %c0_i32_0 = arith.constant 0 : i32
    return %arg0, %c0_i32, %arg1 : i32, i32, i32
  }
  func.func @transform_2(%arg0: i32, %arg1: i32) -> (i32, i32) {
    %c0_i32 = arith.constant 0 : i32
    %c0_i32_0 = arith.constant 0 : i32
    %c0_i32_1 = arith.constant 0 : i32
    return %c0_i32, %c0_i32_0 : i32, i32
  }
  func.func @transform_3(%arg0: i32, %arg1: i32) -> (i32, i32, i32) {
    %c0_i32 = arith.constant 0 : i32
    %c0_i32_0 = arith.constant 0 : i32
    return %arg0, %c0_i32, %arg1 : i32, i32, i32
  }
  func.func @transform_4(%arg0: i32, %arg1: i32) -> (i32, i32, i32) {
    %c0_i32 = arith.constant 0 : i32
    %c0_i32_0 = arith.constant 0 : i32
    %c0_i32_1 = arith.constant 0 : i32
    return %arg0, %c0_i32, %c0_i32_0 : i32, i32, i32
  }
}

</mosaic_0001>

<bundles_post_ra>
// kernel: tpu_custom_call.1
= control target key start
LH: loop header
LB: loop body
LE: loop exit
PB: predicated region body
PF: predicated region fallthrough
CT: control target
= control target key end

     0   :  { %v1429_v3 = vmov 0.0|0.0   ;;  %vm21_vm0 = vcmask 3072   ;;  %vm1430_vm1 = vmmov 0   ;;  %v1431_v12 = vmov 0.0   ;;  %s1684_s0 = inlined_call_operand.vmem [shape: f32[2,32,16], index: 0, kind: input, shape index: {}]   ;;  %s1685_s1 = inlined_call_operand.vmem [shape: f32[2,32,16], index: 1, kind: input, shape index: {}]   ;;  %s1686_s2 = inlined_call_operand.vmem [shape: f32[8,32], index: 2, kind: input, shape index: {}]   ;;  %s1687_s3 = inlined_call_operand.hbm [shape: f32[2,4,16], index: 3, kind: output, shape index: {0}]   ;;  %s1688_s4 = inlined_call_operand.vmem [shape: f32[2,4,1], index: 4, kind: output, shape index: {1}]  }
   0x1   :  { %v28_v0 = vld [vmem:[%s1684_s0] sm:$0xff]  ;;  %v29_v1 = vld [vmem:[%s1684_s0 + $0x8] sm:$0xff]  ;;  %1303 = vmatprep.subr.bf16.mxu0 %v1429_v3  ;;  %1339 = vmatprep.subr.bf16.mxu1 %v1429_v3  ;;  %v30_v11 = vld [vmem:[%s1684_s0 + $0x10] sm:$0xff]  ;;  %22 = vst.msk [vmem:[#allocation2] sm:$0xf] %vm21_vm0, %v1431_v12  ;;  %v1432_v19 = vmov 0  }
   0x2   :  { %v32_v2 = vld [vmem:[%s1685_s1] sm:$0xff]  ;;  %v33_v4 = vld [vmem:[%s1685_s1 + $0x8] sm:$0xff]  ;;  %1179 = vmatprep.mubr.msk.f32.mxu0 %vm1430_vm1, %v1431_v12  ;;  %1245 = vmatprep.mubr.msk.f32.mxu1 %vm1430_vm1, %v1431_v12  ;;  %23 = vst.msk [vmem:[#allocation2 + $0x4] sm:$0xf] %vm21_vm0, %v1431_v12  ;;  %v31_v16 = vld [vmem:[%s1684_s0 + $0x18] sm:$0xff]  ;;  %vm40_vm2 = vcmask 261120  }
   0x3   :  { %v36_v5 = vmul.f32 %v32_v2, %v28_v0  ;;  %v1102_v6 = vld [vmem:[%s1684_s0 + $0x20] sm:$0xff]  ;;  %v1103_v7 = vld [vmem:[%s1684_s0 + $0x28] sm:$0xff]  ;;  %v37_v8 = vmul.f32 %v33_v4, %v29_v1  ;;  %v34_v17 = vld [vmem:[%s1685_s1 + $0x10] sm:$0xff]  ;;  %1404 = vset.pattern.permute.xlu0 %v1432_v19 }
   0x4   :  { %v1106_v9 = vld [vmem:[%s1685_s1 + $0x20] sm:$0xff]  ;;  %v1107_v10 = vld [vmem:[%s1685_s1 + $0x28] sm:$0xff]  ;;  %v35_v18 = vld [vmem:[%s1685_s1 + $0x18] sm:$0xff]  ;;  %v38_v21 = vmul.f32 %v34_v17, %v30_v11 }
   0x5   :  { %v45_v13 = vand.u32 4294901760, %v36_v5  ;;  %v565_v14 = vmul.f32 %v1106_v9, %v1102_v6  ;;  %v566_v15 = vmul.f32 %v1107_v10, %v1103_v7  ;;  %v48_v20 = vand.u32 4294901760, %v37_v8  ;;  %v1104_v23 = vld [vmem:[%s1684_s0 + $0x30] sm:$0xff]  ;;  %v1105_v24 = vld [vmem:[%s1684_s0 + $0x38] sm:$0xff] }
   0x6   :  { %v39_v22 = vmul.f32 %v35_v18, %v31_v16  ;;  %v1108_v25 = vld [vmem:[%s1685_s1 + $0x30] sm:$0xff]  ;;  %v1109_v29 = vld [vmem:[%s1685_s1 + $0x38] sm:$0xff] }
   0x7   :  { %v1516_v26 = vsub.f32 %v36_v5, %v45_v13  ;;  %v570_v27 = vand.u32 4294901760, %v565_v14  ;;  %v573_v28 = vand.u32 4294901760, %v566_v15  ;;  %v567_v30 = vmul.f32 %v1108_v25, %v1104_v23 }
   0x8   :  { %10 = vsyncpa [#allocation4], 0  ;;  %v1521_v31 = vpack.c.bf16 %v48_v20, %v45_v13  ;;  %v1523_v32 = vsub.f32 %v37_v8, %v48_v20  ;;  %v51_v33 = vand.u32 4294901760, %v38_v21  ;;  %v54_v34 = vand.u32 4294901760, %v39_v22  ;;  %v24_v35 = vld [vmem:[%s1686_s2] sm:$0xff]  ;;  %s1433_s1 = smov 113  }
   0x9   :  { %v1528_v36 = vpack.c.bf16 %v573_v28, %v570_v27  ;;  %v1530_v37 = vsub.f32 %v565_v14, %v570_v27  ;;  %v1532_v38 = vsub.f32 %v566_v15, %v573_v28  ;;  %v568_v39 = vmul.f32 %v1109_v29, %v1105_v24  ;;  %v534_v48 = vld [vmem:[#allocation2] sm:$0xf]  ;;  %v1060_v57 = vld [vmem:[#allocation2 + $0x4] sm:$0xf]  ;;  %s1434_s2 = smov 1   ;;  %s1435_s24 = smov [#allocation3]  }
   0xa   :  { %1305 = vmatpush3.bf16.msra.mxu0 %v1521_v31  ;;  %v1535_v40 = vpack.c.bf16 %v54_v34, %v51_v33  ;;  %v1537_v41 = vsub.f32 %v38_v21, %v51_v33  ;;  %v1539_v42 = vsub.f32 %v39_v22, %v54_v34  ;;  %v576_v43 = vand.u32 4294901760, %v567_v30  ;;  %537 = vperm.xlu0 %1404, %v534_v48   ;;  %s1087_s25 = sshll.u32 %s1435_s24, 4  ;;  %s1088_s25 = int_to_ptr.vmem [resolvable:$true] %s1087_s25 }
   0xb   :  { %1341 = vmatpush3.bf16.msra.mxu1 %v1528_v36  ;;  %1306 = vmatprep.subr.bf16.mxu0 %v1429_v3  ;;  %v579_v44 = vand.u32 4294901760, %v568_v39  ;;  %v42_v45 = vsel %vm40_vm2, %v24_v35, 0  ;;  %v126_v46 = vand.u32 4294901760, %v1516_v26  ;;  %v133_v47 = vand.u32 4294901760, %v1523_v32  ;;  %s1405_s28 = scalar_lea.vmem %s1088_s25, 128  ;;  %p1410_p1 = scmp.lt.s32.totalorder %s1088_s25, %s1088_s25 }
   0xc   :  { %1342 = vmatprep.subr.bf16.mxu1 %v1429_v3  ;;  %v1547_v49 = vsub.f32 %v567_v30, %v576_v43  ;;  %v1549_v50 = vand.u32 4294901760, %v42_v45  ;;  %v651_v51 = vand.u32 4294901760, %v1530_v37  ;;  %v658_v52 = vand.u32 4294901760, %v1532_v38  ;;  %p1406_p0 = scmp.ne.s32.totalorder %s1088_s25, %s1405_s28  ;;  %p1411_p2 = scmp.lt.s32.totalorder %s1405_s28, %s1405_s28 }
   0xd   :  { %v1553_v53 = vpack.c.bf16 %v579_v44, %v576_v43  ;;  %v1555_v54 = vsub.f32 %v568_v39, %v579_v44  ;;  %v127_v55 = vsub.f32 %v1516_v26, %v126_v46  ;;  %v134_v56 = vsub.f32 %v1523_v32, %v133_v47 }
   0xe   :  { %1308 = vmatpush3.bf16.msra.mxu0 %v1535_v40  ;;  %v114_v58 = vsub.f32 %v42_v45, %v1549_v50  ;;  %v652_v59 = vsub.f32 %v1530_v37, %v651_v51  ;;  %v659_v60 = vsub.f32 %v1532_v38, %v658_v52  ;;  %v140_v61 = vand.u32 4294901760, %v1537_v41  ;;  %1063 = vperm.xlu0 %1404, %v1060_v57   ;;  %p1412_p3 = por %p1411_p2, %p1410_p1 }
   0xf   :  { %1344 = vmatpush3.bf16.msra.mxu1 %v1553_v53  ;;  %1309 = vmatprep.subr.bf16.mxu0 %v1429_v3  ;;  %v128_v62 = vand.u32 4294901760, %v127_v55  ;;  %v135_v63 = vand.u32 4294901760, %v134_v56  ;;  %v147_v0 = vand.u32 4294901760, %v1539_v42  ;;  %v665_v1 = vand.u32 4294901760, %v1547_v49 }
  0x10   :  { %v115_v2 = vand.u32 4294901760, %v114_v58  ;;  %1345 = vmatprep.subr.bf16.mxu1 %v1429_v3  ;;  %v653_v4 = vand.u32 4294901760, %v652_v59  ;;  %v660_v5 = vand.u32 4294901760, %v659_v60  ;;  %v141_v6 = vsub.f32 %v1537_v41, %v140_v61  ;;  %p1413_p4 = pnand %p1412_p3, %p1406_p0 }
  0x11   :  { %v148_v7 = vsub.f32 %v1539_v42, %v147_v0  ;;  %v666_v8 = vsub.f32 %v1547_v49, %v665_v1  ;;  %v672_v9 = vand.u32 4294901760, %v1555_v54  ;;  %v1310_v11 = vpack.c.bf16 %v135_v63, %v128_v62 }
  0x12   :  { %v116_v10 = vsub.f32 %v114_v58, %v115_v2  ;;  %v1346_v13 = vpack.c.bf16 %v660_v5, %v653_v4  ;;  %v142_v14 = vand.u32 4294901760, %v141_v6  ;;  %v1316_v22 = vpack.c.bf16 %v1523_v32, %v1516_v26 }
  0x13   :  { %v149_v15 = vand.u32 4294901760, %v148_v7  ;;  %v667_v16 = vand.u32 4294901760, %v666_v8  ;;  %v673_v17 = vsub.f32 %v1555_v54, %v672_v9  ;;  %v1352_v23 = vpack.c.bf16 %v1532_v38, %v1530_v37 }
  0x14   :  { %v117_v18 = vand.u32 4294901760, %v116_v10  ;;  %v1319_v24 = vpack.c.bf16 %v1539_v42, %v1537_v41  ;;  %v1355_v25 = vpack.c.bf16 %v1555_v54, %v1547_v49  ;;  %v1328_v27 = vpack.c.bf16 %v133_v47, %v126_v46 }
  0x15   :  { %v674_v19 = vand.u32 4294901760, %v673_v17  ;;  %v1313_v20 = vpack.c.bf16 %v149_v15, %v142_v14  ;;  %v1364_v28 = vpack.c.bf16 %v658_v52, %v651_v51  ;;  %v1331_v26 = vpack.c.bf16 %v147_v0, %v140_v61 }
  0x16   :  { %1180 = vmatmul.mubr.f32.vlgmr.msra.gmra.mrb[0].mxu0 %v117_v18  ;;  %1246 = vmatmul.mubr.f32.vlgmr.msra.gmra.mrb[0].mxu1 %v117_v18  ;;  %v1367_v29 = vpack.c.bf16 %v672_v9, %v665_v1  ;;  %vm546_vm3 = vcmask 7172  }
  0x17   :  { %1311 = vmatpush3.bf16.msra.mxu0 %v1310_v11  ;;  %1347 = vmatpush3.bf16.msra.mxu1 %v1346_v13  ;;  %v1349_v21 = vpack.c.bf16 %v674_v19, %v667_v16 }
  0x18   :  { %1312 = vmatprep.subr.bf16.mxu0 %v1429_v3  ;;  %1348 = vmatprep.subr.bf16.mxu1 %v1429_v3 }
  0x19   :  { %1190 = vmatprep.mubr.msk.f32.mxu0 %vm1430_vm1, %v1431_v12  ;;  %1256 = vmatprep.mubr.msk.f32.mxu1 %vm1430_vm1, %v1431_v12 }
  0x1b   :  { %1314 = vmatpush3.bf16.msra.mxu0 %v1313_v20  ;;  %1350 = vmatpush3.bf16.msra.mxu1 %v1349_v21 }
  0x1c   :  { %1315 = vmatprep.subr.bf16.mxu0 %v1429_v3  ;;  %1351 = vmatprep.subr.bf16.mxu1 %v1429_v3 }
  0x1e   :  { %1191 = vmatmul.mubr.f32.vlgmr.msra.gmra.mrb[0].mxu0 %v1549_v50  ;;  %1257 = vmatmul.mubr.f32.vlgmr.msra.gmra.mrb[0].mxu1 %v1549_v50 }
  0x1f   :  { %1317 = vmatpush3.bf16.msra.mxu0 %v1316_v22  ;;  %1353 = vmatpush3.bf16.msra.mxu1 %v1352_v23 }
  0x20   :  { %1318 = vmatprep.subr.bf16.mxu0 %v1429_v3  ;;  %1354 = vmatprep.subr.bf16.mxu1 %v1429_v3 }
  0x21   :  { %1201 = vmatprep.mubr.msk.f32.mxu0 %vm1430_vm1, %v1431_v12  ;;  %1267 = vmatprep.mubr.msk.f32.mxu1 %vm1430_vm1, %v1431_v12 }
  0x23   :  { %1320 = vmatpush3.bf16.msra.mxu0 %v1319_v24  ;;  %1356 = vmatpush3.bf16.msra.mxu1 %v1355_v25 }
  0x24   :  { %1321 = vmatprep.subr.bf16.mxu0 %v1429_v3  ;;  %1357 = vmatprep.subr.bf16.mxu1 %v1429_v3 }
  0x26   :  { %1202 = vmatmul.mubr.f32.vlgmr.msra.gmra.mrb[0].mxu0 %v114_v58  ;;  %1268 = vmatmul.mubr.f32.vlgmr.msra.gmra.mrb[0].mxu1 %v114_v58 }
  0x27   :  { %1323 = vmatpush3.bf16.msra.mxu0 %v1521_v31  ;;  %1359 = vmatpush3.bf16.msra.mxu1 %v1528_v36 }
  0x28   :  { %1324 = vmatprep.subr.bf16.mxu0 %v1429_v3  ;;  %1360 = vmatprep.subr.bf16.mxu1 %v1429_v3 }
  0x29   :  { %1212 = vmatprep.mubr.msk.f32.mxu0 %vm1430_vm1, %v1431_v12  ;;  %1278 = vmatprep.mubr.msk.f32.mxu1 %vm1430_vm1, %v1431_v12 }
  0x2b   :  { %1326 = vmatpush3.bf16.msra.mxu0 %v1535_v40  ;;  %1362 = vmatpush3.bf16.msra.mxu1 %v1553_v53 }
  0x2c   :  { %1327 = vmatprep.subr.bf16.mxu0 %v1429_v3  ;;  %1363 = vmatprep.subr.bf16.mxu1 %v1429_v3 }
  0x2e   :  { %1213 = vmatmul.mubr.f32.vlgmr.msra.gmra.mrb[0].mxu0 %v115_v2  ;;  %1279 = vmatmul.mubr.f32.vlgmr.msra.gmra.mrb[0].mxu1 %v115_v2 }
  0x2f   :  { %1329 = vmatpush3.bf16.msra.mxu0 %v1328_v27  ;;  %1365 = vmatpush3.bf16.msra.mxu1 %v1364_v28 }
  0x30   :  { %1330 = vmatprep.subr.bf16.mxu0 %v1429_v3  ;;  %1366 = vmatprep.subr.bf16.mxu1 %v1429_v3 }
  0x31   :  { %1223 = vmatprep.mubr.msk.f32.mxu0 %vm1430_vm1, %v1431_v12  ;;  %1289 = vmatprep.mubr.msk.f32.mxu1 %vm1430_vm1, %v1431_v12 }
  0x33   :  { %1332 = vmatpush3.bf16.msra.mxu0 %v1331_v26  ;;  %1368 = vmatpush3.bf16.msra.mxu1 %v1367_v29 }
  0x34   :  { %1333 = vmatprep.subr.bf16.mxu0 %v1429_v3  ;;  %1369 = vmatprep.subr.bf16.mxu1 %v1429_v3 }
  0x36   :  { %1224 = vmatmul.mubr.f32.vlgmr.msra.gmra.mrb[0].mxu0 %v1549_v50  ;;  %1290 = vmatmul.mubr.f32.vlgmr.msra.gmra.mrb[0].mxu1 %v1549_v50 }
  0x37   :  { %1335 = vmatpush3.bf16.msra.mxu0 %v1521_v31  ;;  %1371 = vmatpush3.bf16.msra.mxu1 %v1528_v36  ;;  %v25_v36 = vlaneseq }
  0x38   :  { %1336 = vmatprep.subr.bf16.mxu0 %v1429_v3  ;;  %1372 = vmatprep.subr.bf16.mxu1 %v1429_v3 }
  0x39   :  { %1234 = vmatprep.mubr.msk.f32.mxu0 %vm1430_vm1, %v1431_v12  ;;  %1300 = vmatprep.mubr.msk.f32.mxu1 %vm1430_vm1, %v1431_v12  ;;  %v26_v37 = vand.u32 127, %v25_v36 }
  0x3b   :  { %1338 = vmatpush3.bf16.msra.mxu0 %v1535_v40  ;;  %1374 = vmatpush3.bf16.msra.mxu1 %v1553_v53  ;;  %vm27_vm4 = vcmp.eq.s32.totalorder %v26_v37, 0 }
  0x3e   :  { %1235 = vmatmul.mubr.f32.vlgmr.msra.gmra.mrb[0].mxu0 %v1549_v50  ;;  %1301 = vmatmul.mubr.f32.vlgmr.msra.gmra.mrb[0].mxu1 %v1549_v50 }
  0x89   :  { %v538_v34 = vpop.permute.xlu0 %537 }
  0x8d   :  { %v1064_v35 = vpop.permute.xlu0 %1063 }
 0x111   :  { %v525_v30 = vpop.f32.mrb[0].mxu0  ;;  %v1050_v31 = vpop.f32.mrb[0].mxu1 }
 0x112   :  { %v1302_v32 = vpop.f32.mrb[1].mxu1  ;;  %551 = vrot.lane.b32.xlu1 %v525_v30, %s1433_s1  ;;  %v1236_v3 = vpop.f32.mrb[1].mxu0  ;;  %543 = vrot.lane.b32.xlu0 %v525_v30, %s1434_s2  ;;  %v530_v33 = vrot.slane %v525_v30, 4  ;;  %v1055_v12 = vrot.slane %v1050_v31, 4 }
 0x116   :  { %532 = vrot.lane.b32.xlu1 %v530_v33, %s1434_s2  ;;  %1070 = vrot.lane.b32.xlu0 %v1050_v31, %s1434_s2 }
 0x11a   :  { %1057 = vrot.lane.b32.xlu1 %v1055_v12, %s1434_s2 }
 0x11e   :  { %1077 = vrot.lane.b32.xlu1 %v1050_v31, %s1433_s1 }
 0x184   :  { %v552_v38 = vpop.permute.xlu1 %551  ;;  %v544_v39 = vpop.permute.xlu0 %543 }
 0x185   :  { %554 = vst.msk [vmem:[%s1688_s4 - $0x4] sm:$0xf0] %vm546_vm3, %v552_v38  ;;  %547 = vst.msk [vmem:[#allocation2 - $0x4] sm:$0xf0] %vm546_vm3, %v544_v39 }
 0x188   :  { %v533_v40 = vpop.permute.xlu1 %532  ;;  %v1071_v41 = vpop.permute.xlu0 %1070 }
 0x189   :  { %v540_v42 = vsel %vm27_vm4, %v538_v34, %v533_v40  ;;  %1073 = vst.msk [vmem:[#allocation2] sm:$0xf0] %vm546_vm3, %v1071_v41 }
 0x18a   :  { %v541_v43 = vadd.f32 %v540_v42, %v525_v30 }
 0x18c   :  { %542 = vst [vmem:[#allocation3] sm:$0xf] %v541_v43  ;;  %v1058_v44 = vpop.permute.xlu1 %1057 }
 0x18d   :  { %v1066_v45 = vsel %vm27_vm4, %v1064_v35, %v1058_v44 }
 0x18e   :  { %v1067_v46 = vadd.f32 %v1066_v45, %v1050_v31 }
 0x190   :  { %1069 = vst [vmem:[#allocation3 + $0x4] sm:$0xf] %v1067_v46  ;;  %v1078_v47 = vpop.permute.xlu1 %1077 }
 0x191   :  { %1110 = vst.msk [vmem:[%s1688_s4] sm:$0xf0] %vm546_vm3, %v1078_v47 }
 0x192   :  { %1416 = shalt.err (!%p1413_p4)
}
 0x193   :  { %s1417_s5 = scalar_lea.hbm %s1687_s3, 128 }
 0x194   :  { %p1418_p5 = scmp.ne.s32.totalorder %s1687_s3, %s1417_s5  ;;  %p1421_p6 = scmp.lt.u32.totalorder %s1417_s5, %s1687_s3 }
 0x196   :  { %p1423_p7 = pnand %p1421_p6, %p1418_p5 }
 0x198   :  { %1426 = shalt.err (!%p1423_p7)
}
 0x199   :  { %s1436_s4 = smov 64   ;;  %s1437_s10 = smov 4  }
 0x19a   :  { %1093 = dma.vmem_to_hbm [thread:$0]  %s1088_s25, 128, %s1687_s3, [#allocation4], %s1436_s4, %s1436_s4, %s1437_s10  }
 0x19b   :  { %1427 = dma.done.wait [#allocation4], 128  }
 0x19c   :  { %1428 = vsyncadd [#allocation4], 4294967168 }
 0x19d   :  { %1101 = vsyncpa [#allocation4], 1 }

</bundles_post_ra>
